<compile_context>
chip_gen: v7x
topology: tpu7x:2x2x1
jax: 0.10.0
libtpu: 0.0.40
codegen_flags: <defaults>
</compile_context>

<pallas_src>
import math

import jax
import jax.numpy as jnp
from jax import lax
from jax.experimental import pallas as pl
from jax.experimental.pallas import tpu as pltpu

KERNEL_SIZE = 7
PAD = KERNEL_SIZE // 2


def _round_up(x, m):
    return (x + m - 1) // m * m


def _make_kernel(C, TC, L, Lp):
    K = KERNEL_SIZE
    n_chunks = TC // 8
    needs_ch_mask = (C % TC) != 0
    inv_c = 1.0 / float(C)

    def kernel(params_ref, x_ref, o_ref, sum8_ref, max8_ref):
        # params_ref: SMEM (2K + 1,)  [avg taps | max taps | bias]
        # x_ref:      VMEM (TC, Lp)   one channel tile of one batch element
        # o_ref:      VMEM (1, Lp)    output row (resident across channel axis)
        # sum8_ref / max8_ref: VMEM (8, Lp) f32 running accumulators
        c_idx = pl.program_id(1)

        # ---- init accumulators on the first channel tile ----
        @pl.when(c_idx == 0)
        def _init():
            sum8_ref[...] = jnp.zeros_like(sum8_ref)
            max8_ref[...] = jnp.full_like(max8_ref, -jnp.inf)

        # ---- channel reduction: 8-sublane-group accumulation on the VPU ----
        for g in range(n_chunks):
            chunk = x_ref[g * 8:(g + 1) * 8, :].astype(jnp.float32)  # (8, Lp)
            sum8_ref[...] += chunk  # padded channels are zero -> sum unaffected
            if needs_ch_mask:
                rows = (c_idx * TC + g * 8
                        + lax.broadcasted_iota(jnp.int32, (8, Lp), 0))
                chunk = jnp.where(rows < C, chunk, -jnp.inf)
            max8_ref[...] = jnp.maximum(max8_ref[...], chunk)

        # ---- finalize: cross-sublane reduce, 7-tap conv via roll, sigmoid ----
        @pl.when(c_idx == pl.num_programs(1) - 1)
        def _finalize():
            avg_row = jnp.sum(sum8_ref[...], axis=0, keepdims=True) * inv_c
            max_row = jnp.max(max8_ref[...], axis=0, keepdims=True)
            slab = jnp.concatenate([avg_row, max_row], axis=0)       # (2, Lp)

            lane = lax.broadcasted_iota(jnp.int32, (1, Lp), 1)
            acc = jnp.full((1, Lp), params_ref[2 * K], jnp.float32)  # bias
            for k in range(K):
                d = k - PAD                       # tap offset in [-3, 3]
                if d == 0:
                    sh = slab
                else:
                    sh = pltpu.roll(slab, shift=(-d) % Lp, axis=1)
                    if d > 0:
                        mask = lane < (L - d)     # right-edge zero padding
                    else:
                        mask = lane >= (-d)       # left-edge zero padding
                    sh = jnp.where(mask, sh, 0.0)
                acc = (acc
                       + params_ref[k] * sh[0:1, :]        # avg-channel tap
                       + params_ref[K + k] * sh[1:2, :])   # max-channel tap

            o_ref[...] = jax.nn.sigmoid(acc).astype(o_ref.dtype)

    return kernel


def spatial_attention(x, weight, bias):
    """x: (N, C, L) f32/bf16; weight: (1, 2, K) f32; bias: (1,) f32 -> (N, 1, L) f32."""
    N, C, L = x.shape
    K = KERNEL_SIZE

    # Keep bf16 in HBM (half the DMA bytes, upcast in-kernel); otherwise use f32.
    if x.dtype not in (jnp.bfloat16, jnp.float32):
        x = x.astype(jnp.float32)
    itemsize = jnp.dtype(x.dtype).itemsize

    # Lane-dense length (multiple of 128). Zero padding == conv zero padding.
    Lp = _round_up(L, 128)

    # Channel tile: multiple of 8, per-buffer block <= ~2 MiB, bounded unroll.
    tc_cap = max(8, (2 * 1024 * 1024 // (Lp * itemsize)) // 8 * 8)
    TC = int(min(_round_up(C, 8), tc_cap, 256))
    Cp = _round_up(C, TC)

    xp = jnp.pad(x, ((0, 0), (0, Cp - C), (0, Lp - L)))

    params = jnp.concatenate([
        weight.reshape(2 * K).astype(jnp.float32),   # [avg taps | max taps]
        bias.reshape(1).astype(jnp.float32),
    ])

    grid = (N, Cp // TC)

    # Explicit VMEM budget (double-buffered input + output + scratch + slack).
    blk_in = TC * Lp * itemsize
    vmem_est = 2 * blk_in + 2 * Lp * 4 + 2 * 8 * Lp * 4 + (1 << 20)
    vmem_limit = int(min(max(2 * vmem_est, 4 << 20), 48 << 20))

    cost = pl.CostEstimate(
        flops=int(2 * N * Cp * Lp + N * Lp * (4 * K + 4)),
        transcendentals=int(N * Lp),
        bytes_accessed=int(N * Cp * Lp * itemsize + N * Lp * 4 + params.size * 4),
    )

    kernel = _make_kernel(C, TC, L, Lp)

    out = pl.pallas_call(
        kernel,
        out_shape=jax.ShapeDtypeStruct((N, 1, Lp), jnp.float32),
        grid=grid,
        in_specs=[
            pl.BlockSpec(memory_space=pltpu.MemorySpace.SMEM),       # params
            pl.BlockSpec((None, TC, Lp), lambda n, c: (n, c, 0)),    # x tile
        ],
        out_specs=pl.BlockSpec((None, 1, Lp), lambda n, c: (n, 0, 0)),
        scratch_shapes=[
            pltpu.VMEM((8, Lp), jnp.float32),   # running channel sum
            pltpu.VMEM((8, Lp), jnp.float32),   # running channel max
        ],
        compiler_params=pltpu.CompilerParams(
            dimension_semantics=("parallel", "arbitrary"),
            vmem_limit_bytes=vmem_limit,
        ),
        cost_estimate=cost,
    )(params, xp)

    return out[:, :, :L]


def spatial_attention_ref(x, weight, bias):
    """Pure-JAX reference (mirrors the PyTorch forward)."""
    x = x.astype(jnp.float32)
    avg = jnp.mean(x, axis=1, keepdims=True)
    mx = jnp.max(x, axis=1, keepdims=True)
    h = jnp.concatenate([avg, mx], axis=1)                       # (N, 2, L)
    h = jnp.pad(h, ((0, 0), (0, 0), (PAD, PAD)))
    L = x.shape[-1]
    out = jnp.zeros((x.shape[0], 1, L), jnp.float32) + bias[0]
    for c in range(2):
        for k in range(KERNEL_SIZE):
            out = out + weight[0, c, k] * h[:, c:c + 1, k:k + L]
    return jax.nn.sigmoid(out)


if __name__ == "__main__":
    key = jax.random.PRNGKey(0)
    kx, kw, kb, kx2 = jax.random.split(key, 4)

    # Deterministic Conv1d(2, 1, 7) params, PyTorch-style uniform init.
    fan_in = 2 * KERNEL_SIZE
    bound = 1.0 / math.sqrt(fan_in)
    weight = jax.random.uniform(kw, (1, 2, KERNEL_SIZE), jnp.float32,
                                minval=-bound, maxval=bound)
    bias = jax.random.uniform(kb, (1,), jnp.float32, minval=-bound, maxval=bound)

    # Small shape matching the module's forward: (N, C, L).
    N, C, L = 2, 4, 16
    x = jax.random.normal(kx, (N, C, L), dtype=jnp.float32)

    out = jax.block_until_ready(spatial_attention(x, weight, bias))
    ref = spatial_attention_ref(x, weight, bias)
    assert out.shape == (N, 1, L)
    assert jnp.allclose(out, ref, atol=1e-5, rtol=1e-5), "mismatch vs reference"

    # Extra check: exercise channel-padding mask and non-128 L (halo masks).
    N2, C2, L2 = 2, 11, 200
    x2 = jax.random.normal(kx2, (N2, C2, L2), dtype=jnp.float32)
    out2 = jax.block_until_ready(spatial_attention(x2, weight, bias))
    ref2 = spatial_attention_ref(x2, weight, bias)
    assert out2.shape == (N2, 1, L2)
    assert jnp.allclose(out2, ref2, atol=1e-5, rtol=1e-5), "mismatch vs reference (padded case)"

    print("KERNEL_OK")
</pallas_src>

<mosaic_0001>
module attributes {stable_mosaic.version = 11 : i64} {
  func.func @kernel(%arg0: i32, %arg1: i32, %arg2: memref<15xf32, #tpu.memory_space<smem>>, %arg3: memref<1x8x128xf32, #tpu.memory_space<vmem>>, %arg4: memref<1x1x128xf32, #tpu.memory_space<vmem>>, %arg5: memref<8x128xf32, #tpu.memory_space<vmem>>, %arg6: memref<8x128xf32, #tpu.memory_space<vmem>>) attributes {dimension_semantics = [#tpu.dimension_semantics<parallel>, #tpu.dimension_semantics<arbitrary>], iteration_bounds = array<i64: 2, 1>, scalar_prefetch = 0 : i64, scratch_operands = 2 : i64, tpu.core_type = #tpu.core_type<tc>, window_params = [{transform_indices = @transform_0, window_bounds = array<i64: 15>}, {transform_indices = @transform_1, window_bounds = array<i64: 1, 8, 128>}, {transform_indices = @transform_2, window_bounds = array<i64: 1, 1, 128>}]} {
    %c0_i32 = arith.constant 0 : i32
    %0 = arith.cmpi eq, %arg1, %c0_i32 : i32
    %1 = arith.extui %0 : i1 to i32
    %c0_i32_0 = arith.constant 0 : i32
    %2 = arith.cmpi ne, %1, %c0_i32_0 : i32
    scf.if %2 {
      %cst_14 = arith.constant 0.000000e+00 : f32
      %23 = vector.broadcast %cst_14 : f32 to vector<8x128xf32>
      %c0_15 = arith.constant 0 : index
      %c0_16 = arith.constant 0 : index
      %24 = vector.load %arg5[%c0_15, %c0_16] : memref<8x128xf32, #tpu.memory_space<vmem>>, vector<8x128xf32>
      tpu.vector_store %arg5[%c0_15, %c0_16], %23 {strides = array<i32>} : memref<8x128xf32, #tpu.memory_space<vmem>>, vector<8x128xf32>,
      %cst_17 = arith.constant 0xFF800000 : f32
      %25 = vector.broadcast %cst_17 : f32 to vector<8x128xf32>
      %c0_18 = arith.constant 0 : index
      %c0_19 = arith.constant 0 : index
      %26 = vector.load %arg6[%c0_18, %c0_19] : memref<8x128xf32, #tpu.memory_space<vmem>>, vector<8x128xf32>
      tpu.vector_store %arg6[%c0_18, %c0_19], %25 {strides = array<i32>} : memref<8x128xf32, #tpu.memory_space<vmem>>, vector<8x128xf32>,
    } else {
    }
    %c0 = arith.constant 0 : index
    %c0_1 = arith.constant 0 : index
    %c0_2 = arith.constant 0 : index
    %3 = vector.load %arg3[%c0, %c0_1, %c0_2] : memref<1x8x128xf32, #tpu.memory_space<vmem>>, vector<1x8x128xf32>
    %4 = vector.shape_cast %3 : vector<1x8x128xf32> to vector<8x128xf32>
    %c0_3 = arith.constant 0 : index
    %c0_4 = arith.constant 0 : index
    %5 = vector.load %arg5[%c0_3, %c0_4] : memref<8x128xf32, #tpu.memory_space<vmem>>, vector<8x128xf32>
    %6 = arith.addf %5, %4 : vector<8x128xf32>
    %c0_5 = arith.constant 0 : index
    %c0_6 = arith.constant 0 : index
    %7 = vector.load %arg5[%c0_5, %c0_6] : memref<8x128xf32, #tpu.memory_space<vmem>>, vector<8x128xf32>
    tpu.vector_store %arg5[%c0_5, %c0_6], %6 {strides = array<i32>} : memref<8x128xf32, #tpu.memory_space<vmem>>, vector<8x128xf32>,
    %c8_i32 = arith.constant 8 : i32
    %8 = arith.muli %arg1, %c8_i32 : i32
    %c0_i32_7 = arith.constant 0 : i32
    %9 = arith.addi %8, %c0_i32_7 : i32
    %10 = tpu.iota {dimensions = array<i32: 0>} : vector<8x128xi32>
    %11 = vector.broadcast %9 : i32 to vector<8x128xi32>
    %12 = arith.addi %11, %10 : vector<8x128xi32>
    %c4_i32 = arith.constant 4 : i32
    %13 = vector.broadcast %c4_i32 : i32 to vector<8x128xi32>
    %14 = arith.cmpi slt, %12, %13 : vector<8x128xi32>
    %cst = arith.constant 0xFF800000 : f32
    %15 = vector.broadcast %cst : f32 to vector<8x128xf32>
    %16 = arith.select %14, %4, %15 : vector<8x128xi1>, vector<8x128xf32>
    %c0_8 = arith.constant 0 : index
    %c0_9 = arith.constant 0 : index
    %17 = vector.load %arg6[%c0_8, %c0_9] : memref<8x128xf32, #tpu.memory_space<vmem>>, vector<8x128xf32>
    %18 = arith.maximumf %17, %16 : vector<8x128xf32>
    %c0_10 = arith.constant 0 : index
    %c0_11 = arith.constant 0 : index
    %19 = vector.load %arg6[%c0_10, %c0_11] : memref<8x128xf32, #tpu.memory_space<vmem>>, vector<8x128xf32>
    tpu.vector_store %arg6[%c0_10, %c0_11], %18 {strides = array<i32>} : memref<8x128xf32, #tpu.memory_space<vmem>>, vector<8x128xf32>,
    %c0_i32_12 = arith.constant 0 : i32
    %20 = arith.cmpi eq, %arg1, %c0_i32_12 : i32
    %21 = arith.extui %20 : i1 to i32
    %c0_i32_13 = arith.constant 0 : i32
    %22 = arith.cmpi ne, %21, %c0_i32_13 : i32
    scf.if %22 {
      %c0_14 = arith.constant 0 : index
      %c0_15 = arith.constant 0 : index
      %23 = vector.load %arg5[%c0_14, %c0_15] : memref<8x128xf32, #tpu.memory_space<vmem>>, vector<8x128xf32>
      %cst_16 = arith.constant dense<0.000000e+00> : vector<128xf32>
      %24 = vector.multi_reduction <add>, %23, %cst_16 [0] : vector<8x128xf32> to vector<128xf32>
      %25 = vector.shape_cast %24 : vector<128xf32> to vector<1x128xf32>
      %cst_17 = arith.constant 2.500000e-01 : f32
      %26 = vector.broadcast %cst_17 : f32 to vector<1x128xf32>
      %27 = arith.mulf %25, %26 : vector<1x128xf32>
      %c0_18 = arith.constant 0 : index
      %c0_19 = arith.constant 0 : index
      %28 = vector.load %arg6[%c0_18, %c0_19] : memref<8x128xf32, #tpu.memory_space<vmem>>, vector<8x128xf32>
      %cst_20 = arith.constant dense<0xFF800000> : vector<128xf32>
      %29 = vector.multi_reduction <maximumf>, %28, %cst_20 [0] : vector<8x128xf32> to vector<128xf32>
      %30 = vector.shape_cast %29 : vector<128xf32> to vector<1x128xf32>
      %31 = tpu.concatenate %27, %30 in 0 : vector<1x128xf32>, vector<1x128xf32> -> vector<2x128xf32>
      %32 = tpu.iota {dimensions = array<i32: 1>} : vector<1x128xi32>
      %c14 = arith.constant 14 : index
      %33 = memref.load %arg2[%c14] : memref<15xf32, #tpu.memory_space<smem>>
      %34 = vector.broadcast %33 : f32 to vector<1x128xf32>
      %c3_i32 = arith.constant 3 : i32
      %35 = tpu.dynamic_rotate %31 by %c3_i32 dim 1 : vector<2x128xf32>, i32 -> vector<2x128xf32>
      %c3_i32_21 = arith.constant 3 : i32
      %36 = vector.broadcast %c3_i32_21 : i32 to vector<1x128xi32>
      %37 = arith.cmpi sge, %32, %36 : vector<1x128xi32>
      %cst_22 = arith.constant 0.000000e+00 : f32
      %38 = vector.shape_cast %37 : vector<1x128xi1> to vector<1x128xi1>
      %39 = vector.broadcast %38 : vector<1x128xi1> to vector<2x128xi1>
      %40 = vector.broadcast %cst_22 : f32 to vector<2x128xf32>
      %41 = arith.select %39, %35, %40 : vector<2x128xi1>, vector<2x128xf32>
      %c0_23 = arith.constant 0 : index
      %42 = memref.load %arg2[%c0_23] : memref<15xf32, #tpu.memory_space<smem>>
      %43 = vector.extract_strided_slice %41 {offsets = [0, 0], sizes = [1, 128], strides = [1, 1]} : vector<2x128xf32> to vector<1x128xf32>
      %44 = vector.broadcast %42 : f32 to vector<1x128xf32>
      %45 = arith.mulf %44, %43 : vector<1x128xf32>
      %46 = arith.addf %34, %45 : vector<1x128xf32>
      %c7 = arith.constant 7 : index
      %47 = memref.load %arg2[%c7] : memref<15xf32, #tpu.memory_space<smem>>
      %48 = vector.extract_strided_slice %41 {offsets = [1, 0], sizes = [1, 128], strides = [1, 1]} : vector<2x128xf32> to vector<1x128xf32>
      %49 = vector.broadcast %47 : f32 to vector<1x128xf32>
      %50 = arith.mulf %49, %48 : vector<1x128xf32>
      %51 = arith.addf %46, %50 : vector<1x128xf32>
      %c2_i32 = arith.constant 2 : i32
      %52 = tpu.dynamic_rotate %31 by %c2_i32 dim 1 : vector<2x128xf32>, i32 -> vector<2x128xf32>
      %c2_i32_24 = arith.constant 2 : i32
      %53 = vector.broadcast %c2_i32_24 : i32 to vector<1x128xi32>
      %54 = arith.cmpi sge, %32, %53 : vector<1x128xi32>
      %cst_25 = arith.constant 0.000000e+00 : f32
      %55 = vector.shape_cast %54 : vector<1x128xi1> to vector<1x128xi1>
      %56 = vector.broadcast %55 : vector<1x128xi1> to vector<2x128xi1>
      %57 = vector.broadcast %cst_25 : f32 to vector<2x128xf32>
      %58 = arith.select %56, %52, %57 : vector<2x128xi1>, vector<2x128xf32>
      %c1 = arith.constant 1 : index
      %59 = memref.load %arg2[%c1] : memref<15xf32, #tpu.memory_space<smem>>
      %60 = vector.extract_strided_slice %58 {offsets = [0, 0], sizes = [1, 128], strides = [1, 1]} : vector<2x128xf32> to vector<1x128xf32>
      %61 = vector.broadcast %59 : f32 to vector<1x128xf32>
      %62 = arith.mulf %61, %60 : vector<1x128xf32>
      %63 = arith.addf %51, %62 : vector<1x128xf32>
      %c8 = arith.constant 8 : index
      %64 = memref.load %arg2[%c8] : memref<15xf32, #tpu.memory_space<smem>>
      %65 = vector.extract_strided_slice %58 {offsets = [1, 0], sizes = [1, 128], strides = [1, 1]} : vector<2x128xf32> to vector<1x128xf32>
      %66 = vector.broadcast %64 : f32 to vector<1x128xf32>
      %67 = arith.mulf %66, %65 : vector<1x128xf32>
      %68 = arith.addf %63, %67 : vector<1x128xf32>
      %c1_i32 = arith.constant 1 : i32
      %69 = tpu.dynamic_rotate %31 by %c1_i32 dim 1 : vector<2x128xf32>, i32 -> vector<2x128xf32>
      %c1_i32_26 = arith.constant 1 : i32
      %70 = vector.broadcast %c1_i32_26 : i32 to vector<1x128xi32>
      %71 = arith.cmpi sge, %32, %70 : vector<1x128xi32>
      %cst_27 = arith.constant 0.000000e+00 : f32
      %72 = vector.shape_cast %71 : vector<1x128xi1> to vector<1x128xi1>
      %73 = vector.broadcast %72 : vector<1x128xi1> to vector<2x128xi1>
      %74 = vector.broadcast %cst_27 : f32 to vector<2x128xf32>
      %75 = arith.select %73, %69, %74 : vector<2x128xi1>, vector<2x128xf32>
      %c2 = arith.constant 2 : index
      %76 = memref.load %arg2[%c2] : memref<15xf32, #tpu.memory_space<smem>>
      %77 = vector.extract_strided_slice %75 {offsets = [0, 0], sizes = [1, 128], strides = [1, 1]} : vector<2x128xf32> to vector<1x128xf32>
      %78 = vector.broadcast %76 : f32 to vector<1x128xf32>
      %79 = arith.mulf %78, %77 : vector<1x128xf32>
      %80 = arith.addf %68, %79 : vector<1x128xf32>
      %c9 = arith.constant 9 : index
      %81 = memref.load %arg2[%c9] : memref<15xf32, #tpu.memory_space<smem>>
      %82 = vector.extract_strided_slice %75 {offsets = [1, 0], sizes = [1, 128], strides = [1, 1]} : vector<2x128xf32> to vector<1x128xf32>
      %83 = vector.broadcast %81 : f32 to vector<1x128xf32>
      %84 = arith.mulf %83, %82 : vector<1x128xf32>
      %85 = arith.addf %80, %84 : vector<1x128xf32>
      %c3 = arith.constant 3 : index
      %86 = memref.load %arg2[%c3] : memref<15xf32, #tpu.memory_space<smem>>
      %87 = vector.extract_strided_slice %31 {offsets = [0, 0], sizes = [1, 128], strides = [1, 1]} : vector<2x128xf32> to vector<1x128xf32>
      %88 = vector.broadcast %86 : f32 to vector<1x128xf32>
      %89 = arith.mulf %88, %87 : vector<1x128xf32>
      %90 = arith.addf %85, %89 : vector<1x128xf32>
      %c10 = arith.constant 10 : index
      %91 = memref.load %arg2[%c10] : memref<15xf32, #tpu.memory_space<smem>>
      %92 = vector.extract_strided_slice %31 {offsets = [1, 0], sizes = [1, 128], strides = [1, 1]} : vector<2x128xf32> to vector<1x128xf32>
      %93 = vector.broadcast %91 : f32 to vector<1x128xf32>
      %94 = arith.mulf %93, %92 : vector<1x128xf32>
      %95 = arith.addf %90, %94 : vector<1x128xf32>
      %c127_i32 = arith.constant 127 : i32
      %96 = tpu.dynamic_rotate %31 by %c127_i32 dim 1 : vector<2x128xf32>, i32 -> vector<2x128xf32>
      %c15_i32 = arith.constant 15 : i32
      %97 = vector.broadcast %c15_i32 : i32 to vector<1x128xi32>
      %98 = arith.cmpi slt, %32, %97 : vector<1x128xi32>
      %cst_28 = arith.constant 0.000000e+00 : f32
      %99 = vector.shape_cast %98 : vector<1x128xi1> to vector<1x128xi1>
      %100 = vector.broadcast %99 : vector<1x128xi1> to vector<2x128xi1>
      %101 = vector.broadcast %cst_28 : f32 to vector<2x128xf32>
      %102 = arith.select %100, %96, %101 : vector<2x128xi1>, vector<2x128xf32>
      %c4 = arith.constant 4 : index
      %103 = memref.load %arg2[%c4] : memref<15xf32, #tpu.memory_space<smem>>
      %104 = vector.extract_strided_slice %102 {offsets = [0, 0], sizes = [1, 128], strides = [1, 1]} : vector<2x128xf32> to vector<1x128xf32>
      %105 = vector.broadcast %103 : f32 to vector<1x128xf32>
      %106 = arith.mulf %105, %104 : vector<1x128xf32>
      %107 = arith.addf %95, %106 : vector<1x128xf32>
      %c11 = arith.constant 11 : index
      %108 = memref.load %arg2[%c11] : memref<15xf32, #tpu.memory_space<smem>>
      %109 = vector.extract_strided_slice %102 {offsets = [1, 0], sizes = [1, 128], strides = [1, 1]} : vector<2x128xf32> to vector<1x128xf32>
      %110 = vector.broadcast %108 : f32 to vector<1x128xf32>
      %111 = arith.mulf %110, %109 : vector<1x128xf32>
      %112 = arith.addf %107, %111 : vector<1x128xf32>
      %c126_i32 = arith.constant 126 : i32
      %113 = tpu.dynamic_rotate %31 by %c126_i32 dim 1 : vector<2x128xf32>, i32 -> vector<2x128xf32>
      %c14_i32 = arith.constant 14 : i32
      %114 = vector.broadcast %c14_i32 : i32 to vector<1x128xi32>
      %115 = arith.cmpi slt, %32, %114 : vector<1x128xi32>
      %cst_29 = arith.constant 0.000000e+00 : f32
      %116 = vector.shape_cast %115 : vector<1x128xi1> to vector<1x128xi1>
      %117 = vector.broadcast %116 : vector<1x128xi1> to vector<2x128xi1>
      %118 = vector.broadcast %cst_29 : f32 to vector<2x128xf32>
      %119 = arith.select %117, %113, %118 : vector<2x128xi1>, vector<2x128xf32>
      %c5 = arith.constant 5 : index
      %120 = memref.load %arg2[%c5] : memref<15xf32, #tpu.memory_space<smem>>
      %121 = vector.extract_strided_slice %119 {offsets = [0, 0], sizes = [1, 128], strides = [1, 1]} : vector<2x128xf32> to vector<1x128xf32>
      %122 = vector.broadcast %120 : f32 to vector<1x128xf32>
      %123 = arith.mulf %122, %121 : vector<1x128xf32>
      %124 = arith.addf %112, %123 : vector<1x128xf32>
      %c12 = arith.constant 12 : index
      %125 = memref.load %arg2[%c12] : memref<15xf32, #tpu.memory_space<smem>>
      %126 = vector.extract_strided_slice %119 {offsets = [1, 0], sizes = [1, 128], strides = [1, 1]} : vector<2x128xf32> to vector<1x128xf32>
      %127 = vector.broadcast %125 : f32 to vector<1x128xf32>
      %128 = arith.mulf %127, %126 : vector<1x128xf32>
      %129 = arith.addf %124, %128 : vector<1x128xf32>
      %c125_i32 = arith.constant 125 : i32
      %130 = tpu.dynamic_rotate %31 by %c125_i32 dim 1 : vector<2x128xf32>, i32 -> vector<2x128xf32>
      %c13_i32 = arith.constant 13 : i32
      %131 = vector.broadcast %c13_i32 : i32 to vector<1x128xi32>
      %132 = arith.cmpi slt, %32, %131 : vector<1x128xi32>
      %cst_30 = arith.constant 0.000000e+00 : f32
      %133 = vector.shape_cast %132 : vector<1x128xi1> to vector<1x128xi1>
      %134 = vector.broadcast %133 : vector<1x128xi1> to vector<2x128xi1>
      %135 = vector.broadcast %cst_30 : f32 to vector<2x128xf32>
      %136 = arith.select %134, %130, %135 : vector<2x128xi1>, vector<2x128xf32>
      %c6 = arith.constant 6 : index
      %137 = memref.load %arg2[%c6] : memref<15xf32, #tpu.memory_space<smem>>
      %138 = vector.extract_strided_slice %136 {offsets = [0, 0], sizes = [1, 128], strides = [1, 1]} : vector<2x128xf32> to vector<1x128xf32>
      %139 = vector.broadcast %137 : f32 to vector<1x128xf32>
      %140 = arith.mulf %139, %138 : vector<1x128xf32>
      %141 = arith.addf %129, %140 : vector<1x128xf32>
      %c13 = arith.constant 13 : index
      %142 = memref.load %arg2[%c13] : memref<15xf32, #tpu.memory_space<smem>>
      %143 = vector.extract_strided_slice %136 {offsets = [1, 0], sizes = [1, 128], strides = [1, 1]} : vector<2x128xf32> to vector<1x128xf32>
      %144 = vector.broadcast %142 : f32 to vector<1x128xf32>
      %145 = arith.mulf %144, %143 : vector<1x128xf32>
      %146 = arith.addf %141, %145 : vector<1x128xf32>
      %147 = arith.negf %146 : vector<1x128xf32>
      %148 = math.exp %147 : vector<1x128xf32>
      %cst_31 = arith.constant 1.000000e+00 : f32
      %149 = vector.broadcast %cst_31 : f32 to vector<1x128xf32>
      %150 = arith.addf %149, %148 : vector<1x128xf32>
      %151 = arith.divf %149, %150 : vector<1x128xf32>
      %c0_32 = arith.constant 0 : index
      %c0_33 = arith.constant 0 : index
      %c0_34 = arith.constant 0 : index
      %152 = vector.load %arg4[%c0_32, %c0_33, %c0_34] : memref<1x1x128xf32, #tpu.memory_space<vmem>>, vector<1x1x128xf32>
      %153 = vector.shape_cast %152 : vector<1x1x128xf32> to vector<1x128xf32>
      %154 = vector.shape_cast %151 : vector<1x128xf32> to vector<1x1x128xf32>
      tpu.vector_store %arg4[%c0_32, %c0_33, %c0_34], %154 {strides = array<i32>} : memref<1x1x128xf32, #tpu.memory_space<vmem>>, vector<1x1x128xf32>,
    } else {
    }
    return
  }
  func.func @transform_0(%arg0: i32, %arg1: i32) -> i32 {
    %c0_i32 = arith.constant 0 : i32
    %c0_i32_0 = arith.constant 0 : i32
    return %c0_i32 : i32
  }
  func.func @transform_1(%arg0: i32, %arg1: i32) -> (i32, i32, i32) {
    %c0_i32 = arith.constant 0 : i32
    %c0_i32_0 = arith.constant 0 : i32
    return %arg0, %arg1, %c0_i32 : i32, i32, i32
  }
  func.func @transform_2(%arg0: i32, %arg1: i32) -> (i32, i32, i32) {
    %c0_i32 = arith.constant 0 : i32
    %c0_i32_0 = arith.constant 0 : i32
    %c0_i32_1 = arith.constant 0 : i32
    return %arg0, %c0_i32, %c0_i32_0 : i32, i32, i32
  }
}

</mosaic_0001>

<bundles_post_ra>
// kernel: tpu_custom_call.1
= control target key start
LH: loop header
LB: loop body
LE: loop exit
PB: predicated region body
PF: predicated region fallthrough
CT: control target
= control target key end

     0   :  { %7 = vsyncpa [#allocation7], 0  ;;  %s978_s0 = inlined_call_operand.hbm [shape: f32[15], index: 0, kind: input, shape index: {}]   ;;  %s979_s1 = inlined_call_operand.hbm [shape: f32[2,8,128], index: 1, kind: input, shape index: {}]   ;;  %s980_s2 = inlined_call_operand.hbm [shape: f32[2,1,128], index: 2, kind: output, shape index: {}]  }
   0x1   :  { %8 = vsyncpa [#allocation5], 0 }
   0x2   :  { %10 = vsyncpa [#allocation5 + $0x1], 0 }
   0x3   :  { %11 = vsyncpa [#allocation6], 0 }
   0x4   :  { %13 = vsyncpa [#allocation6 + $0x1], 0  ;;  %s715_s9 = smov 0   ;;  %s717_s10 = smov 0  }
   0x5   :  { %s719_s11 = smov 0   ;;  %s721_s12 = smov 0  }
   0x6   :  { %s723_s13 = smov 0   ;;  %s725_s14 = smov 0  }
   0x7 LB: > { %s449_s15 = sadd.s32 4294967295, %s689_s14   ;;  %s450_s16 = sadd.s32 4294967294, %s689_s14   ;;  %s689_s14 = sphi %s725_s14, %s19_s14   ;;  %s685_s13 = sphi %s723_s13, %s1004_s13   ;;  %s681_s12 = sphi %s721_s12, %s1003_s12   ;;  %s677_s11 = sphi %s719_s11, %s1002_s11   ;;  %s673_s10 = sphi %s717_s10, %s1001_s10   ;;  %s669_s9 = sphi %s715_s9, %s1000_s9  }
   0x8   : > { %p74_p0 = scmp.ne.s32.totalorder %s673_s10, %s669_s9  ;;  %p749_p1 = scmp.eq.s32.totalorder %s449_s15, 0 }
   0x9   : > { %p753_p2 = scmp.eq.s32.totalorder %s449_s15, 1  ;;  %p104_p3 = scmp.eq.s32.totalorder %s450_s16, 1 }
   0xa   : > { %s985_s17 = scalar_select %p749_p1, 1, 0 }
   0xb   : > { %p759_p4 = por %p749_p1, %p74_p0  ;;  %p451_p5 = scmp.ge.s32.totalorder %s689_s14, 1 }
   0xc   : > { %p764_p6 = por %p104_p3, %p74_p0  ;;  %p111_p7 = scmp.lt.s32.totalorder %s689_s14, 3 }
   0xd   : > { %s987_s19 = scalar_select %p759_p4, 1, 0 }
   0xe   : > { %s988_s20 = scalar_select %p764_p6, 1, 0 }
   0xf   : > { %p769_p8 = pnand %p451_p5, %p111_p7  ;;  %s31_s22 = sadd.s32 1, %s685_s13 }
  0x10   : > { %p783_p12 = scmp.ge.s32.totalorder %s31_s22, 2  ;;  %s61_s25 = sadd.s32 1, %s677_s11 }
  0x11   : > { %p485_p10 = pneg %p769_p8  ;;  %p68_p13 = scmp.ne.s32.totalorder %s677_s11, %s673_s10 }
  0x12   : > { %p69_p0 = scmp.eq.s32.totalorder %s689_s14, 0  ;;  %s560_s28 = scalar_lea.hbm %s978_s0, 16 }
  0x13   : > { %p779_p11 = pnand %p485_p10, %p749_p1  ;;  %p561_p3 = scmp.ne.s32.totalorder %s978_s0, %s560_s28 }
  0x14   : > { %p567_p9 = scmp.lt.u32.totalorder %s560_s28, %s978_s0 }
  0x15   : > { %p562_p5 = pneg %p779_p11 }
  0x17   : > { %p563_p7 = pnand %p562_p5, %p561_p3 }
  0x19   : > { %p564_p10 = pneg %p563_p7 }
  0x1b   : > { %p569_p6 = pnand %p567_p9, %p564_p10 }
  0x1d   : > { %572 = shalt.err (!%p569_p6)
}
  0x1e   : > { %s691_s5 = smov [#allocation4]   ;;  %s1006_s22 = smov (%p783_p12, %s31_s22), 0 }
  0x1f   : > { %488 = dma.hbm_to_smem (!%p779_p11), %s978_s0, 16, %s691_s5, [#allocation7]  }
  0x20   : > { %p814_p6 = por %p69_p0, %p68_p13  ;;  %p823_p9 = por %p753_p2, %p68_p13 }
  0x21   : > { %s56_s16 = ssub.s32 %s685_s13, %s1006_s22  ;;  %p498_p3 = scmp.lt.s32.totalorder %s689_s14, 2 }
  0x22   : > { %s993_s15 = scalar_select %p823_p9, 1, 0 }
  0x23   : > { %p59_p5 = scmp.eq.s32.totalorder %s56_s16, 0  ;;  %s133_s23 = sand.u32 1, %s677_s11  }
  0x24   : > { %s454_s24 = sshll.u32 %s133_s23, 3  ;;  %s455_s27 = sshll.u32 %s685_s13, 7 }
  0x25   : > { %s832_s26 = scalar_select %p59_p5, %s677_s11, %s61_s25  }
  0x26   : > { %s838_s30 = scalar_lea.hbm %s979_s1, %s455_s27  ;;  %s137_s18 = scalar_lea.vmem [#allocation8], %s454_s24 }
  0x27   : > { %s145_s3 = sshll.u32 %s137_s18, 4  ;;  %p844_p2 = pnand %p498_p3, %p814_p6  ;;  %s840_s3 = int_to_ptr.vmem [resolvable:$true] %s145_s3 }
  0x28   : > { %s134_s25 = scalar_lea.sflag [#allocation5], %s133_s23  ;;  %s573_s5 = scalar_lea.hbm %s838_s30, 128 }
  0x29   : > { %p574_p11 = scmp.ne.s32.totalorder %s838_s30, %s573_s5  ;;  %p575_p12 = pneg %p844_p2 }
  0x2a   : > { %s578_s16 = scalar_lea.hbm %s979_s1, 256  ;;  %p579_p7 = scmp.lt.u32.totalorder %s838_s30, %s979_s1 }
  0x2b   : > { %p576_p13 = pnand %p575_p12, %p574_p11  ;;  %p580_p10 = scmp.lt.u32.totalorder %s578_s16, %s573_s5 }
  0x2c   : > { %p582_p3 = scmp.lt.u32.totalorder %s573_s5, %s838_s30 }
  0x2d   : > { %p577_p0 = pneg %p576_p13  ;;  %p581_p6 = por %p580_p10, %p579_p7 }
  0x2f   : > { %p583_p5 = por %p582_p3, %p581_p6 }
  0x31   : > { %p584_p9 = pnand %p583_p5, %p577_p0 }
  0x33   : > { %587 = shalt.err (!%p584_p9)
}
  0x34   : > { %s588_s23 = scalar_lea.vmem %s840_s3, 128  ;;  %s692_s27 = smov [#allocation8]  }
  0x35   : > { %p589_p11 = scmp.ne.s32.totalorder %s840_s3, %s588_s23  ;;  %s593_s28 = sshll.u32 %s692_s27, 4  ;;  %s594_s28 = int_to_ptr.vmem [resolvable:$false] %s593_s28 }
  0x36   : > { %s595_s29 = scalar_lea.vmem %s594_s28, 256  ;;  %p596_p1 = scmp.lt.s32.totalorder %s840_s3, %s594_s28 }
  0x37   : > { %p591_p13 = pnand %p589_p11, %p575_p12  ;;  %p597_p7 = scmp.lt.s32.totalorder %s595_s29, %s588_s23 }
  0x39   : > { %p592_p4 = pneg %p591_p13  ;;  %p598_p10 = por %p597_p7, %p596_p1 }
  0x3b   : > { %p599_p6 = pnand %p598_p10, %p592_p4 }
  0x3d   : > { %602 = shalt.err (!%p599_p6)
}
  0x3e   : > { %492 = dma.hbm_to_vmem [thread:$0]  (!%p844_p2), %s838_s30, 128, %s840_s3, %s134_s25  }
  0x3f   : > { %154 = sbr.rel (%p769_p8) target bundleno = 282 (0x11a), region = 28  ;;  %p995_p9 = scmp.ne.s32.totalorder (!%p769_p8), %s985_s17, 0 }
  0x46   : > { %656 = dma.done.wait (%p995_p9), [#allocation7], 16  }
  0x47   : > { %658 = vsyncadd (%p995_p9), [#allocation7], 4294967280  ;;  %s880_s18 = sand.u32 1, %s673_s10   ;;  %p996_p1 = scmp.ne.s32.totalorder %s987_s19, 0 }
  0x48   : > { %s458_s5 = sshll.u32 %s880_s18, 3  ;;  %s161_s4 = scalar_lea.sflag [#allocation5], %s880_s18 }
  0x49   : > { %s164_s6 = scalar_lea.vmem [#allocation8], %s458_s5 }
  0x4a   : > { %660 = dma.done.wait (%p996_p1), %s161_s4, 128  }
  0x4b   : > { %662 = vsyncadd (%p996_p1), %s161_s4, 4294967168 }
  0x4c   : > { %169 = sfence }
  0x4d   : > { %v191_v0 = vld [vmem:[%s164_s6] sm:$0xff]  ;;  %v196_v1 = vlaneseq  ;;  %vm223_vm1 = vcmask 1040384   ;;  %s693_s17 = smov 3   ;;  %s694_s19 = smov 1  }
  0x4e   : > { %v209_v2 = vrot.slane %v191_v0, 4  ;;  %s695_s21 = smov 2   ;;  %s696_s30 = smov 127  }
  0x4f   : > { %v197_v3 = vshrl.u32 %v196_v1, 7  ;;  %s697_s3 = smov 126   ;;  %s698_s25 = smov 125   ;;  %v896_v18 = vand.u32 127, %v196_v1 }
  0x50   : > { %v210_v4 = vadd.f32 %v209_v2, %v191_v0  ;;  %s235_s7 = sld [smem:[#allocation4]]  ;;  %s460_s16 = sld [smem:[#allocation4 + $0x7]] }
  0x51   : > { %vm200_vm0 = vcmp.lt.s32.totalorder %v197_v3, 4  ;;  %s459_s8 = sld [smem:[#allocation4 + $0xe]]  ;;  %s461_s24 = sld [smem:[#allocation4 + $0x1]]  ;;  %vm231_vm2 = vcmp.ge.s32.totalorder %v896_v18, 3  ;;  %vm265_vm3 = vcmp.ge.s32.totalorder %v896_v18, 1  ;;  %vm248_vm4 = vcmp.ge.s32.totalorder %v896_v18, 2 }
  0x52   : > { %v201_v5 = vsel %vm200_vm0, %v191_v0, -inf  ;;  %v211_v6 = vrot.slane %v210_v4, 2  ;;  %s462_s23 = sld [smem:[#allocation4 + $0x8]]  ;;  %s464_s27 = sld [smem:[#allocation4 + $0x9]]  ;;  %vm293_vm5 = vcmp.lt.s32.totalorder %v896_v18, 15  ;;  %vm310_vm6 = vcmp.lt.s32.totalorder %v896_v18, 14 }
  0x53   : > { %v217_v7 = vrot.slane %v201_v5, 4  ;;  %s898_s28 = sld [smem:[#allocation4 + $0x2]]  ;;  %s904_s5 = sld [smem:[#allocation4 + $0x3]]  ;;  %vm327_vm7 = vcmp.lt.s32.totalorder %v896_v18, 13 }
  0x54   : > { %v212_v8 = vadd.f32 %v211_v6, %v210_v4  ;;  %s901_s29 = sld [smem:[#allocation4 + $0xa]]  ;;  %s907_s4 = sld [smem:[#allocation4 + $0xb]] }
  0x55   : > { %v218_v9 = vmax.f32 %v201_v5, %v217_v7  ;;  %s910_s6 = sld [smem:[#allocation4 + $0x4]]  ;;  %p997_p8 = scmp.ne.s32.totalorder %s993_s15, 0 }
  0x56   : > { %v213_v10 = vrot.slane %v212_v8, 1  ;;  %v236_v19 = vstv %s235_s7  ;;  %v240_v20 = vstv %s460_s16 }
  0x57   : > { %v219_v11 = vrot.slane %v218_v9, 2  ;;  %v228_v23 = vstv %s459_s8  ;;  %v253_v27 = vstv %s461_s24 }
  0x58   : > { %v214_v12 = vadd.f32 %v213_v10, %v212_v8  ;;  %v257_v28 = vstv %s462_s23  ;;  %v274_v29 = vstv %s464_s27  ;;  %s350_s23 = scalar_lea.sflag [#allocation6], %s880_s18 }
  0x59   : > { %v220_v13 = vmax.f32 %v218_v9, %v219_v11  ;;  %v270_v35 = vstv %s898_s28  ;;  %v281_v45 = vstv %s904_s5 }
  0x5a   : > { %v215_v14 = vmul.f32 0.25, %v214_v12  ;;  %v285_v40 = vstv %s901_s29  ;;  %v302_v49 = vstv %s907_s4 }
  0x5b   : > { %v221_v15 = vrot.slane %v220_v13, 1  ;;  %v298_v54 = vstv %s910_s6 }
  0x5d   : > { %v222_v16 = vmax.f32 %v220_v13, %v221_v15 }
  0x5f   : > { %v888_v17 = vsel %vm223_vm1, %v215_v14, %v222_v16 }
  0x60   : > { %229 = vrot.lane.b32.xlu0 %v888_v17, %s693_s17  ;;  %263 = vrot.lane.b32.xlu1 %v888_v17, %s694_s19  ;;  %s913_s17 = sld [smem:[#allocation4 + $0xc]]  ;;  %s469_s19 = sld [smem:[#allocation4 + $0x5]]  ;;  %v286_v48 = vmul.f32 %v285_v40, %v888_v17  ;;  %v282_v52 = vmul.f32 %v281_v45, %v888_v17 }
  0x62   : > { %v288_v56 = vrot.slane %v286_v48, 1 }
  0x64   : > { %246 = vrot.lane.b32.xlu0 %v888_v17, %s695_s21  ;;  %291 = vrot.lane.b32.xlu1 %v888_v17, %s696_s30  ;;  %s472_s21 = sld [smem:[#allocation4 + $0xd]]  ;;  %s471_s30 = sld [smem:[#allocation4 + $0x6]] }
  0x66   : > { %v319_v58 = vstv %s913_s17  ;;  %v315_v63 = vstv %s469_s19 }
  0x68   : > { %308 = vrot.lane.b32.xlu0 %v888_v17, %s697_s3  ;;  %325 = vrot.lane.b32.xlu1 %v888_v17, %s698_s25  ;;  %s474_s3 = sshll.u32 %s681_s12, 4  ;;  %s184_s25 = scalar_lea.vmem [#allocation9], %s880_s18 }
  0x69   : > { %s362_s7 = sshll.u32 %s184_s25, 4  ;;  %s929_s24 = scalar_lea.hbm %s980_s2, %s474_s3  ;;  %s931_s7 = int_to_ptr.vmem [resolvable:$true] %s362_s7 }
  0x6a   : > { %v336_v3 = vstv %s472_s21  ;;  %v332_v7 = vstv %s471_s30  ;;  %s603_s27 = scalar_lea.vmem %s931_s7, 16  ;;  %s699_s12 = smov [#allocation9]  }
  0x6b   : > { %p604_p4 = scmp.ne.s32.totalorder %s931_s7, %s603_s27  ;;  %s607_s28 = sshll.u32 %s699_s12, 4  ;;  %s608_s28 = int_to_ptr.vmem [resolvable:$false] %s607_s28 }
  0x6c   : > { %s609_s29 = scalar_lea.vmem %s608_s28, 32  ;;  %p610_p0 = scmp.lt.s32.totalorder %s931_s7, %s608_s28 }
  0x6d   : > { %p605_p2 = pnand %p604_p4, %p997_p8  ;;  %p611_p3 = scmp.lt.s32.totalorder %s609_s29, %s603_s27 }
  0x6f   : > { %p606_p12 = pneg %p605_p2  ;;  %p612_p5 = por %p611_p3, %p610_p0 }
  0x71   : > { %p613_p11 = pnand %p612_p5, %p606_p12 }
  0xd2   : > { %v230_v21 = vpop.permute.xlu0 %229  ;;  %v264_v22 = vpop.permute.xlu1 %263 }
  0xd3   : > { %v234_v24 = vsel %vm231_vm2, %v230_v21, 0.0  ;;  %v268_v30 = vsel %vm265_vm3, %v264_v22, 0.0 }
  0xd4   : > { %v237_v25 = vmul.f32 %v236_v19, %v234_v24  ;;  %v241_v26 = vmul.f32 %v240_v20, %v234_v24  ;;  %v275_v39 = vmul.f32 %v274_v29, %v268_v30  ;;  %v271_v43 = vmul.f32 %v270_v35, %v268_v30 }
  0xd6   : > { %v238_v31 = vadd.f32 %v237_v25, %v228_v23  ;;  %v243_v32 = vrot.slane %v241_v26, 1  ;;  %v247_v33 = vpop.permute.xlu0 %246  ;;  %v292_v44 = vpop.permute.xlu1 %291  ;;  %v277_v47 = vrot.slane %v275_v39, 1 }
  0xd7   : > { %v251_v34 = vsel %vm248_vm4, %v247_v33, 0.0  ;;  %v296_v50 = vsel %vm293_vm5, %v292_v44, 0.0 }
  0xd8   : > { %v245_v36 = vadd.f32 %v243_v32, %v238_v31  ;;  %v254_v37 = vmul.f32 %v253_v27, %v251_v34  ;;  %v258_v38 = vmul.f32 %v257_v28, %v251_v34  ;;  %v303_v57 = vmul.f32 %v302_v49, %v296_v50 }
  0xd9   : > { %v299_v61 = vmul.f32 %v298_v54, %v296_v50 }
  0xda   : > { %v255_v41 = vadd.f32 %v254_v37, %v245_v36  ;;  %v260_v42 = vrot.slane %v258_v38, 1  ;;  %v309_v53 = vpop.permute.xlu0 %308  ;;  %v326_v62 = vpop.permute.xlu1 %325  ;;  %v305_v1 = vrot.slane %v303_v57, 1 }
  0xdb   : > { %v313_v59 = vsel %vm310_vm6, %v309_v53, 0.0  ;;  %v330_v4 = vsel %vm327_vm7, %v326_v62, 0.0 }
  0xdc   : > { %v262_v46 = vadd.f32 %v260_v42, %v255_v41  ;;  %v320_v2 = vmul.f32 %v319_v58, %v313_v59  ;;  %v316_v6 = vmul.f32 %v315_v63, %v313_v59  ;;  %v337_v10 = vmul.f32 %v336_v3, %v330_v4 }
  0xdd   : > { %v333_v12 = vmul.f32 %v332_v7, %v330_v4 }
  0xde   : > { %v272_v51 = vadd.f32 %v271_v43, %v262_v46  ;;  %v322_v9 = vrot.slane %v320_v2, 1  ;;  %v339_v14 = vrot.slane %v337_v10, 1 }
  0xe0   : > { %v279_v55 = vadd.f32 %v277_v47, %v272_v51 }
  0xe2   : > { %v283_v60 = vadd.f32 %v282_v52, %v279_v55 }
  0xe4   : > { %v290_v0 = vadd.f32 %v288_v56, %v283_v60 }
  0xe6   : > { %v300_v5 = vadd.f32 %v299_v61, %v290_v0 }
  0xe8   : > { %v307_v8 = vadd.f32 %v305_v1, %v300_v5 }
  0xea   : > { %v317_v11 = vadd.f32 %v316_v6, %v307_v8 }
  0xec   : > { %v324_v13 = vadd.f32 %v322_v9, %v317_v11 }
  0xee   : > { %v334_v15 = vadd.f32 %v333_v12, %v324_v13 }
  0xf0   : > { %v341_v16 = vadd.f32 %v339_v14, %v334_v15 }
  0xf2   : > { %v473_v17 = vmul.f32 -1.442695, %v341_v16 }
  0xf4   : > { %556 = vpow2.f32 %v473_v17 }
  0xfe   : > { %v557_v18 = vpop.eup %556 }
  0xff   : > { %v345_v19 = vadd.f32 1.0, %v557_v18 }
 0x101   : > { %558 = vrcp.f32 %v345_v19 }
 0x10b   : > { %v559_v20 = vpop.eup %558 }
 0x10c   : > { %348 = vst [vmem:[%s184_s25] sm:$0x1] %v559_v20 }
 0x10d   : > { %616 = shalt.err (!%p613_p11)
}
 0x10e   : > { %s617_s18 = scalar_lea.hbm %s929_s24, 16  ;;  %s621_s6 = scalar_lea.hbm %s980_s2, 32 }
 0x10f   : > { %p618_p13 = scmp.ne.s32.totalorder %s929_s24, %s617_s18  ;;  %p622_p6 = scmp.lt.u32.totalorder %s929_s24, %s980_s2 }
 0x110   : > { %p623_p9 = scmp.lt.u32.totalorder %s621_s6, %s617_s18  ;;  %p625_p4 = scmp.lt.u32.totalorder %s617_s18, %s929_s24 }
 0x111   : > { %p619_p7 = pnand %p618_p13, %p997_p8 }
 0x112   : > { %p624_p1 = por %p623_p9, %p622_p6 }
 0x113   : > { %p620_p10 = pneg %p619_p7 }
 0x114   : > { %p626_p2 = por %p625_p4, %p624_p1 }
 0x116   : > { %p627_p12 = pnand %p626_p2, %p620_p10 }
 0x118   : > { %630 = shalt.err (!%p627_p12)
}
 0x119   : > { %483 = dma.vmem_to_hbm [thread:$0]  (%p997_p8), %s931_s7, 16, %s929_s24, %s350_s23  }
 0x11a PF: > { %s374_s21 = sand.u32 1, %s669_s9   ;;  %p998_p0 = scmp.ne.s32.totalorder %s988_s20, 0 }
 0x11b   : > { %p999_p3 = scmp.ge.s32.totalorder %s689_s14, 2  ;;  %s375_s30 = scalar_lea.sflag [#allocation6], %s374_s21 }
 0x11d   : > { %p494_p5 = pnand %p999_p3, %p998_p0 }
 0x11f   : > { %664 = dma.done.wait (!%p494_p5), %s375_s30, 16  }
 0x120   : > { %666 = vsyncadd (!%p494_p5), %s375_s30, 4294967280  ;;  %s19_s14 = sadd.s32 1, %s689_s14   ;;  %s1000_s9 = smov %s673_s10 }
 0x121   : > { %p16_p11 = scmp.ge.s32.totalorder %s19_s14, 4   ;;  %s1001_s10 = smov %s677_s11 }
 0x122   : > { %s1002_s11 = smov %s832_s26  ;;  %s1003_s12 = smov %s685_s13 }
 0x123   : > { %s1004_s13 = smov %s1006_s22  ;;  %18 = sbr.rel (!%p16_p11) target bundleno = 7 (0x7), region = 86 }
 0x12a   :  { %379 = vsyncpa [#allocation5], 1 }
 0x12b   :  { %381 = vsyncpa [#allocation5 + $0x1], 1 }
 0x12c   :  { %382 = vsyncpa [#allocation6], 1 }
 0x12d   :  { %384 = vsyncpa [#allocation6 + $0x1], 1 }
 0x12e   :  { %385 = vsyncpa [#allocation7], 1 }
 0x12f   :  { %387 = vsyncpa [#allocation7 + $0x1], 1 }

</bundles_post_ra>
